<compile_context>
chip_gen: v5e
topology: v5e:2x2
jax: 0.10.0
libtpu: 0.0.40
codegen_flags: <defaults>
</compile_context>

<pallas_src>
import functools

import jax
import jax.numpy as jnp
from jax import lax
from jax.experimental import pallas as pl
from jax.experimental.pallas import tpu as pltpu

BN_EPS = 1e-3  # module: BatchNorm2d(16, eps=0.001)


def _stats_kernel(s_ref, x_ref, w_ref, sum_ref, sq_ref, *, hw, block_hw):
    """Accumulate per-output-channel sum and sum-of-squares of y = (W*hs) @ x."""
    n = pl.program_id(0)
    t = pl.program_id(1)

    @pl.when(jnp.logical_and(n == 0, t == 0))
    def _():
        sum_ref[...] = jnp.zeros_like(sum_ref)
        sq_ref[...] = jnp.zeros_like(sq_ref)

    # Fold hardsigmoid(x10) (one value per input channel) into the 1x1-conv weight columns:
    # W @ diag(hs) @ x == (W * hs) @ x.  This removes a full (C, P) VPU multiply pass.
    hs = jnp.clip(s_ref[...] * (1.0 / 6.0) + 0.5, 0.0, 1.0)                    # (1, C_in)
    w_scaled = w_ref[...] * hs                                                 # (C_out, C_in)

    # 1x1 conv over this spatial tile == channel matmul on the MXU.
    y = jnp.dot(w_scaled, x_ref[...], preferred_element_type=jnp.float32)      # (C_out, T)

    # Mask padded lanes of a partial boundary tile before reducing.
    col = lax.broadcasted_iota(jnp.int32, y.shape, 1)
    valid = (t * block_hw + col) < hw
    y = jnp.where(valid, y, 0.0)

    sum_ref[...] += jnp.sum(y, axis=-1, keepdims=True)
    sq_ref[...] += jnp.sum(y * y, axis=-1, keepdims=True)


def _apply_kernel(s_ref, g_ref, b_ref, sum_ref, sq_ref, x_ref, w_ref, o_ref, *, inv_count):
    """Recompute y per tile and apply BN folded into a single per-channel scale/bias FMA."""
    hs = jnp.clip(s_ref[...] * (1.0 / 6.0) + 0.5, 0.0, 1.0)                    # (1, C_in)
    w_scaled = w_ref[...] * hs                                                 # (C_out, C_in)

    # Training-mode batch statistics (biased variance), folded to scale/bias.
    mean = sum_ref[...] * inv_count                                            # (C_out, 1)
    var = sq_ref[...] * inv_count - mean * mean
    inv_std = lax.rsqrt(var + BN_EPS)                                          # EUP
    scale = g_ref[...] * inv_std
    bias = b_ref[...] - mean * scale

    y = jnp.dot(w_scaled, x_ref[...], preferred_element_type=jnp.float32)      # (C_out, T)
    o_ref[...] = (y * scale + bias).astype(o_ref.dtype)


def fused_hs_mul_conv_bn(x10, x6, weight, gamma, beta, *, block_hw=None):
    """x10: (1, C, 1, 1), x6: (N, C, H, W), weight: (C_out, C_in, 1, 1)."""
    n, c, h, w_sp = x6.shape
    c_out = weight.shape[0]
    hw = h * w_sp

    if block_hw is None:
        target = 16384  # ~1 MiB f32 tile at C=16; amortizes per-step overhead
        block_hw = hw if hw <= target else target
    assert block_hw == hw or block_hw % 128 == 0, "tile must be lane-aligned or full-extent"
    nt = pl.cdiv(hw, block_hw)

    # Free reshapes only -- no HBM transposes on the big tensor.
    x3 = x6.reshape(n, c, hw).astype(jnp.float32)                 # (N, C, HW)
    s = x10.reshape(1, c).astype(jnp.float32)                     # (1, C)
    w2d = weight.reshape(c_out, c).astype(jnp.float32)            # (C_out, C)
    g = gamma.reshape(c_out, 1).astype(jnp.float32)
    b = beta.reshape(c_out, 1).astype(jnp.float32)

    def small(shape):
        return pl.BlockSpec(shape, lambda ni, ti: (0, 0))

    vmem_cap = 32 * 1024 * 1024  # fits all generations incl. v7x's 64 MiB physical VMEM

    # ---- Pass 1: streaming per-channel sum / sum-of-squares over all N*HW positions ----
    sums, sqs = pl.pallas_call(
        functools.partial(_stats_kernel, hw=hw, block_hw=block_hw),
        out_shape=(jax.ShapeDtypeStruct((c_out, 1), jnp.float32),
                   jax.ShapeDtypeStruct((c_out, 1), jnp.float32)),
        grid=(n, nt),
        in_specs=[
            small((1, c)),
            pl.BlockSpec((pl.Squeezed(), c, block_hw), lambda ni, ti: (ni, 0, ti)),
            small((c_out, c)),
        ],
        out_specs=(small((c_out, 1)), small((c_out, 1))),
        compiler_params=pltpu.CompilerParams(
            dimension_semantics=("arbitrary", "arbitrary"),  # resident accumulators
            vmem_limit_bytes=vmem_cap),
    )(s, x3, w2d)

    # ---- Pass 2: recompute y per tile and normalize (fully parallel over (N, tiles)) ----
    out3 = pl.pallas_call(
        functools.partial(_apply_kernel, inv_count=1.0 / float(n * hw)),
        out_shape=jax.ShapeDtypeStruct((n, c_out, hw), jnp.float32),
        grid=(n, nt),
        in_specs=[
            small((1, c)),
            small((c_out, 1)),
            small((c_out, 1)),
            small((c_out, 1)),
            small((c_out, 1)),
            pl.BlockSpec((pl.Squeezed(), c, block_hw), lambda ni, ti: (ni, 0, ti)),
            small((c_out, c)),
        ],
        out_specs=pl.BlockSpec((pl.Squeezed(), c_out, block_hw), lambda ni, ti: (ni, 0, ti)),
        compiler_params=pltpu.CompilerParams(
            dimension_semantics=("parallel", "parallel"),    # shard across TCs (v7x)
            vmem_limit_bytes=vmem_cap),
    )(s, g, b, sums, sqs, x3, w2d)

    # (N, C_out, HW) -> NCHW is a free reshape.
    return out3.reshape(n, c_out, h, w_sp)


def _reference(x10, x6, weight, gamma, beta):
    # Pure-JAX reference (training-mode BN, biased variance).
    hs = jnp.clip(x10 / 6.0 + 0.5, 0.0, 1.0)
    x = hs * x6  # broadcast over N, H, W
    n, c, h, w = x.shape
    w2d = weight.reshape(weight.shape[0], c)
    xf = jnp.transpose(x, (1, 0, 2, 3)).reshape(c, -1)
    y = w2d @ xf
    mean = jnp.mean(y, axis=1, keepdims=True)
    var = jnp.mean((y - mean) ** 2, axis=1, keepdims=True)
    yn = gamma.reshape(-1, 1) * (y - mean) / jnp.sqrt(var + BN_EPS) + beta.reshape(-1, 1)
    return jnp.transpose(yn.reshape(weight.shape[0], n, h, w), (1, 0, 2, 3))


if __name__ == "__main__":
    key = jax.random.PRNGKey(0)
    k1, k2, k3 = jax.random.split(key, 3)

    C = 16                 # fixed by the module (Conv2d(16, 16, 1x1))
    N, H, W = 2, 16, 16    # small spatial size; 1x1 conv + BN are size-agnostic

    x10 = jax.random.normal(k1, (1, C, 1, 1), dtype=jnp.float32)
    x6 = jax.random.normal(k2, (N, C, H, W), dtype=jnp.float32)

    # Deterministic params (kaiming-ish conv weight; BN default init gamma=1, beta=0).
    conv_w = jax.random.normal(k3, (C, C, 1, 1), dtype=jnp.float32) * (1.0 / jnp.sqrt(C))
    gamma = jnp.ones((C,), dtype=jnp.float32)
    beta = jnp.zeros((C,), dtype=jnp.float32)

    # block_hw=128 exercises the tiled (N x spatial) grid path on this small example.
    out = fused_hs_mul_conv_bn(x10, x6, conv_w, gamma, beta, block_hw=128)
    out = jax.block_until_ready(out)

    ref = _reference(x10, x6, conv_w, gamma, beta)
    assert out.shape == (N, C, H, W)
    assert jnp.allclose(out, ref, atol=1e-4, rtol=1e-4)

    print("KERNEL_OK")
</pallas_src>

<mosaic_0001>
module attributes {stable_mosaic.version = 11 : i64} {
  func.func @_stats_kernel(%arg0: i32, %arg1: i32, %arg2: memref<1x16xf32, #tpu.memory_space<vmem>>, %arg3: memref<1x16x128xf32, #tpu.memory_space<vmem>>, %arg4: memref<16x16xf32, #tpu.memory_space<vmem>>, %arg5: memref<16x1xf32, #tpu.memory_space<vmem>>, %arg6: memref<16x1xf32, #tpu.memory_space<vmem>>) attributes {dimension_semantics = [#tpu.dimension_semantics<arbitrary>, #tpu.dimension_semantics<arbitrary>], iteration_bounds = array<i64: 2, 2>, scalar_prefetch = 0 : i64, scratch_operands = 0 : i64, tpu.core_type = #tpu.core_type<tc>, window_params = [{pipeline_mode = #tpu.pipeline_mode<synchronous>, transform_indices = @transform_0, window_bounds = array<i64: 1, 16>}, {transform_indices = @transform_1, window_bounds = array<i64: 1, 16, 128>}, {pipeline_mode = #tpu.pipeline_mode<synchronous>, transform_indices = @transform_2, window_bounds = array<i64: 16, 16>}, {pipeline_mode = #tpu.pipeline_mode<synchronous>, transform_indices = @transform_3, window_bounds = array<i64: 16, 1>}, {pipeline_mode = #tpu.pipeline_mode<synchronous>, transform_indices = @transform_4, window_bounds = array<i64: 16, 1>}]} {
    %c0_i32 = arith.constant 0 : i32
    %0 = arith.cmpi eq, %arg0, %c0_i32 : i32
    %c0_i32_0 = arith.constant 0 : i32
    %1 = arith.cmpi eq, %arg1, %c0_i32_0 : i32
    %2 = arith.andi %0, %1 : i1
    %3 = arith.extui %2 : i1 to i32
    %c0_i32_1 = arith.constant 0 : i32
    %4 = arith.cmpi ne, %3, %c0_i32_1 : i32
    scf.if %4 {
      %cst_23 = arith.constant 0.000000e+00 : f32
      %39 = vector.broadcast %cst_23 : f32 to vector<16x1xf32>
      %c0_24 = arith.constant 0 : index
      %c0_25 = arith.constant 0 : index
      %40 = vector.load %arg5[%c0_24, %c0_25] : memref<16x1xf32, #tpu.memory_space<vmem>>, vector<16x1xf32>
      tpu.vector_store %arg5[%c0_24, %c0_25], %39 {strides = array<i32>} : memref<16x1xf32, #tpu.memory_space<vmem>>, vector<16x1xf32>,
      %cst_26 = arith.constant 0.000000e+00 : f32
      %41 = vector.broadcast %cst_26 : f32 to vector<16x1xf32>
      %c0_27 = arith.constant 0 : index
      %c0_28 = arith.constant 0 : index
      %42 = vector.load %arg6[%c0_27, %c0_28] : memref<16x1xf32, #tpu.memory_space<vmem>>, vector<16x1xf32>
      tpu.vector_store %arg6[%c0_27, %c0_28], %41 {strides = array<i32>} : memref<16x1xf32, #tpu.memory_space<vmem>>, vector<16x1xf32>,
    } else {
    }
    %c0 = arith.constant 0 : index
    %c0_2 = arith.constant 0 : index
    %5 = vector.load %arg2[%c0, %c0_2] : memref<1x16xf32, #tpu.memory_space<vmem>>, vector<1x16xf32>
    %cst = arith.constant 0.166666672 : f32
    %6 = vector.broadcast %cst : f32 to vector<1x16xf32>
    %7 = arith.mulf %5, %6 : vector<1x16xf32>
    %cst_3 = arith.constant 5.000000e-01 : f32
    %8 = vector.broadcast %cst_3 : f32 to vector<1x16xf32>
    %9 = arith.addf %7, %8 : vector<1x16xf32>
    %cst_4 = arith.constant 0.000000e+00 : f32
    %cst_5 = arith.constant 1.000000e+00 : f32
    %10 = vector.broadcast %cst_4 : f32 to vector<1x16xf32>
    %11 = arith.maximumf %10, %9 : vector<1x16xf32>
    %12 = vector.broadcast %cst_5 : f32 to vector<1x16xf32>
    %13 = arith.minimumf %12, %11 : vector<1x16xf32>
    %c0_6 = arith.constant 0 : index
    %c0_7 = arith.constant 0 : index
    %14 = vector.load %arg4[%c0_6, %c0_7] : memref<16x16xf32, #tpu.memory_space<vmem>>, vector<16x16xf32>
    %15 = vector.broadcast %13 : vector<1x16xf32> to vector<16x16xf32>
    %16 = arith.mulf %14, %15 : vector<16x16xf32>
    %c0_8 = arith.constant 0 : index
    %c0_9 = arith.constant 0 : index
    %c0_10 = arith.constant 0 : index
    %17 = vector.load %arg3[%c0_8, %c0_9, %c0_10] : memref<1x16x128xf32, #tpu.memory_space<vmem>>, vector<1x16x128xf32>
    %18 = vector.shape_cast %17 : vector<1x16x128xf32> to vector<16x128xf32>
    %cst_11 = arith.constant dense<0.000000e+00> : vector<16x128xf32>
    %19 = tpu.matmul %16, %18, %cst_11 {dimension_numbers = #tpu.dot_dimension_numbers<[1], [0], [0], [1], [0, 0, 1, 1], [], []>} : vector<16x16xf32>, vector<16x128xf32>, vector<16x128xf32> -> vector<16x128xf32>
    %20 = tpu.iota {dimensions = array<i32: 1>} : vector<16x128xi32>
    %c128_i32 = arith.constant 128 : i32
    %21 = arith.muli %arg1, %c128_i32 : i32
    %22 = vector.broadcast %21 : i32 to vector<16x128xi32>
    %23 = arith.addi %22, %20 : vector<16x128xi32>
    %c256_i32 = arith.constant 256 : i32
    %24 = vector.broadcast %c256_i32 : i32 to vector<16x128xi32>
    %25 = arith.cmpi slt, %23, %24 : vector<16x128xi32>
    %cst_12 = arith.constant 0.000000e+00 : f32
    %26 = vector.broadcast %cst_12 : f32 to vector<16x128xf32>
    %27 = arith.select %25, %19, %26 : vector<16x128xi1>, vector<16x128xf32>
    %c0_13 = arith.constant 0 : index
    %c0_14 = arith.constant 0 : index
    %28 = vector.load %arg5[%c0_13, %c0_14] : memref<16x1xf32, #tpu.memory_space<vmem>>, vector<16x1xf32>
    %cst_15 = arith.constant dense<0.000000e+00> : vector<16xf32>
    %29 = vector.multi_reduction <add>, %27, %cst_15 [1] : vector<16x128xf32> to vector<16xf32>
    %30 = vector.shape_cast %29 : vector<16xf32> to vector<16x1xf32>
    %31 = arith.addf %28, %30 : vector<16x1xf32>
    %c0_16 = arith.constant 0 : index
    %c0_17 = arith.constant 0 : index
    %32 = vector.load %arg5[%c0_16, %c0_17] : memref<16x1xf32, #tpu.memory_space<vmem>>, vector<16x1xf32>
    tpu.vector_store %arg5[%c0_16, %c0_17], %31 {strides = array<i32>} : memref<16x1xf32, #tpu.memory_space<vmem>>, vector<16x1xf32>,
    %c0_18 = arith.constant 0 : index
    %c0_19 = arith.constant 0 : index
    %33 = vector.load %arg6[%c0_18, %c0_19] : memref<16x1xf32, #tpu.memory_space<vmem>>, vector<16x1xf32>
    %34 = arith.mulf %27, %27 : vector<16x128xf32>
    %cst_20 = arith.constant dense<0.000000e+00> : vector<16xf32>
    %35 = vector.multi_reduction <add>, %34, %cst_20 [1] : vector<16x128xf32> to vector<16xf32>
    %36 = vector.shape_cast %35 : vector<16xf32> to vector<16x1xf32>
    %37 = arith.addf %33, %36 : vector<16x1xf32>
    %c0_21 = arith.constant 0 : index
    %c0_22 = arith.constant 0 : index
    %38 = vector.load %arg6[%c0_21, %c0_22] : memref<16x1xf32, #tpu.memory_space<vmem>>, vector<16x1xf32>
    tpu.vector_store %arg6[%c0_21, %c0_22], %37 {strides = array<i32>} : memref<16x1xf32, #tpu.memory_space<vmem>>, vector<16x1xf32>,
    return
  }
  func.func @transform_0(%arg0: i32, %arg1: i32) -> (i32, i32) {
    %c0_i32 = arith.constant 0 : i32
    %c0_i32_0 = arith.constant 0 : i32
    %c0_i32_1 = arith.constant 0 : i32
    return %c0_i32, %c0_i32_0 : i32, i32
  }
  func.func @transform_1(%arg0: i32, %arg1: i32) -> (i32, i32, i32) {
    %c0_i32 = arith.constant 0 : i32
    %c0_i32_0 = arith.constant 0 : i32
    return %arg0, %c0_i32, %arg1 : i32, i32, i32
  }
  func.func @transform_2(%arg0: i32, %arg1: i32) -> (i32, i32) {
    %c0_i32 = arith.constant 0 : i32
    %c0_i32_0 = arith.constant 0 : i32
    %c0_i32_1 = arith.constant 0 : i32
    return %c0_i32, %c0_i32_0 : i32, i32
  }
  func.func @transform_3(%arg0: i32, %arg1: i32) -> (i32, i32) {
    %c0_i32 = arith.constant 0 : i32
    %c0_i32_0 = arith.constant 0 : i32
    %c0_i32_1 = arith.constant 0 : i32
    return %c0_i32, %c0_i32_0 : i32, i32
  }
  func.func @transform_4(%arg0: i32, %arg1: i32) -> (i32, i32) {
    %c0_i32 = arith.constant 0 : i32
    %c0_i32_0 = arith.constant 0 : i32
    %c0_i32_1 = arith.constant 0 : i32
    return %c0_i32, %c0_i32_0 : i32, i32
  }
}

</mosaic_0001>

<bundles_post_ra>
// kernel: tpu_custom_call.1
= control target key start
LH: loop header
LB: loop body
LE: loop exit
PB: predicated region body
PF: predicated region fallthrough
CT: control target
= control target key end

     0   :  { %s920_s0 = inlined_call_operand.hbm [shape: f32[1,16], index: 0, kind: input, shape index: {}]   ;;  %s921_s1 = inlined_call_operand.hbm [shape: f32[2,16,256], index: 1, kind: input, shape index: {}]   ;;  %s922_s2 = inlined_call_operand.hbm [shape: f32[16,16], index: 2, kind: input, shape index: {}]   ;;  %s923_s3 = inlined_call_operand.vmem [shape: f32[16,1], index: 3, kind: output, shape index: {0}]   ;;  %s924_s4 = inlined_call_operand.vmem [shape: f32[16,1], index: 4, kind: output, shape index: {1}]  }
   0x1   :  { %930 = sst [smem:[#allocation12_spill]] %s920_s0 }
   0x2   :  { %931 = sst [smem:[#allocation13_spill]] %s922_s2 }
   0x3   :  { %10 = vsyncpa [#allocation3], 0 }
   0x4   :  { %11 = vsyncpa [#allocation5], 0 }
   0x5   :  { %13 = vsyncpa [#allocation5 + $0x1], 0  ;;  %s727_s15 = smov 0   ;;  %s729_s16 = smov 0  }
   0x6   :  { %s731_s17 = smov 0   ;;  %s733_s18 = smov 0  }
   0x7   :  { %s735_s19 = smov 0   ;;  %s737_s20 = smov 0  }
   0x8   :  { %s739_s21 = smov 0   ;;  %s741_s22 = smov 0  }
   0x9 LB: > { %932 = sst [smem:[#allocation10_spill]] %s686_s20  ;;  %s925_s23 = sadd.s32 4294967295, %s694_s22   ;;  %s694_s22 = sphi %s741_s22, %s19_s22   ;;  %s690_s21 = sphi %s739_s21, %s951_s21   ;;  %s686_s20 = sphi %s737_s20, %s946_s20   ;;  %s682_s19 = sphi %s735_s19, %s950_s19   ;;  %s678_s18 = sphi %s733_s18, %s945_s18   ;;  %s674_s17 = sphi %s731_s17, %s949_s17   ;;  %s670_s16 = sphi %s729_s16, %s948_s16   ;;  %s666_s15 = sphi %s727_s15, %s947_s15  }
   0xa   : > { %p68_p0 = scmp.ne.s32.totalorder %s674_s17, %s670_s16  ;;  %p69_p1 = scmp.eq.s32.totalorder %s694_s22, 0 }
   0xb   : > { %p74_p2 = scmp.ne.s32.totalorder %s670_s16, %s666_s15  ;;  %p773_p3 = scmp.eq.s32.totalorder %s925_s23, 0 }
   0xc   : > { %p777_p4 = por %p69_p1, %p68_p0  ;;  %p416_p5 = scmp.ge.s32.totalorder %s694_s22, 1 }
   0xd   : > { %p784_p6 = por %p773_p3, %p74_p2  ;;  %p148_p7 = scmp.lt.s32.totalorder %s694_s22, 5 }
   0xe   : > { %s936_s2 = sld [smem:[#allocation13_spill]]  ;;  %s696_s6 = smov [#allocation6]  }
   0xf   : > { %p792_p8 = pnand %p416_p5, %p148_p7  ;;  %s173_s7 = sshll.u32 %s696_s6, 4  ;;  %s174_s7 = int_to_ptr.vmem [resolvable:$true] %s173_s7 }
  0x10   : > { %p457_p11 = scmp.lt.s32.totalorder %s694_s22, 4  ;;  %s926_s8 = smov 128  }
  0x11   : > { %p444_p9 = pneg %p792_p8  ;;  %s927_s9 = smov 8  }
  0x12   : > { %p806_p12 = pnand %p457_p11, %p777_p4  ;;  %s939_s0 = sld [smem:[#allocation12_spill]] }
  0x13   : > { %p445_p10 = pnand %p444_p9, %p773_p3  ;;  %s699_s14 = smov [#allocation2]  }
  0x14   : > { %s171_s30 = sshll.u32 %s936_s2, 4  ;;  %s162_s15 = sshll.u32 %s699_s14, 4  ;;  %s172_s30 = int_to_ptr.hbm [resolvable:$true] %s171_s30  ;;  %s163_s15 = int_to_ptr.vmem [resolvable:$true] %s162_s15 }
  0x15   : > { %450 = dma.hbm_to_vmem [thread:$0]  (!%p445_p10), %s172_s30, 256, %s174_s7, [#allocation5], %s926_s8, %s926_s8, %s927_s9  }
  0x16   : > { %s31_s28 = sadd.s32 1, %s690_s21  ;;  %s28_s29 = sadd.s32 1, %s686_s20 }
  0x17   : > { %s187_s30 = sand.u32 1, %s694_s22   ;;  %p29_p13 = scmp.ge.s32.totalorder %s28_s29, 2 }
  0x18   : > { %s160_s13 = sshll.u32 %s939_s0, 4  ;;  %s189_s26 = sand.u32 1, %s674_s17   ;;  %s161_s13 = int_to_ptr.hbm [resolvable:$true] %s160_s13 }
  0x19   : > { %447 = dma.hbm_to_vmem [thread:$0]  (!%p445_p10), %s161_s13, 16, %s163_s15, [#allocation3]  }
  0x1a   : > { %s421_s6 = sshll.u32 %s690_s21, 2  ;;  %s953_s29 = smov (%p29_p13, %s28_s29), 0 }
  0x1b   : > { %940 = sst [smem:[#allocation11_spill]] %s953_s29  ;;  %s955_s28 = smov (!%p29_p13, %s31_s28), %s690_s21 }
  0x1c   : > { %s57_s7 = ssub.s32 %s686_s20, %s953_s29  ;;  %s420_s11 = sshll.u32 %s189_s26, 4 }
  0x1d   : > { %p33_p0 = scmp.ge.s32.totalorder %s955_s28, 2  ;;  %s195_s12 = sadd.s32 %s686_s20, %s421_s6 }
  0x1e   : > { %s191_s14 = scalar_lea.vmem [#allocation4], %s420_s11  ;;  %s422_s15 = sshll.u32 %s195_s12, 3 }
  0x1f   : > { %s200_s13 = sshll.u32 %s191_s14, 4  ;;  %s957_s28 = smov (%p33_p0, %s955_s28), 0  ;;  %s201_s13 = int_to_ptr.vmem [resolvable:$true] %s200_s13 }
  0x20   : > { %s56_s23 = ssub.s32 %s690_s21, %s957_s28  ;;  %s197_s24 = scalar_lea.hbm %s921_s1, %s422_s15 }
  0x21   : > { %s58_s0 = sor.u32 %s57_s7, %s56_s23  ;;  %s198_s2 = sshll.u32 %s197_s24, 4  ;;  %s199_s2 = int_to_ptr.hbm [resolvable:$true] %s198_s2 }
  0x22   : > { %p59_p1 = scmp.eq.s32.totalorder %s58_s0, 0  ;;  %s941_s26 = sadd.s32 1, %s674_s17 }
  0x23   : > { %s188_s6 = scalar_lea.sflag [#allocation5], %s187_s30  ;;  %s700_s11 = smov 256  }
  0x24   : > { %s834_s29 = scalar_select %p59_p1, %s674_s17, %s941_s26  }
  0x25   : > { %s942_s14 = smov 8   ;;  %s943_s20 = smov 128  }
  0x26   : > { %454 = dma.hbm_to_vmem [thread:$0]  (!%p806_p12), %s199_s2, 256, %s201_s13, %s188_s6, %s700_s11, %s943_s20, %s942_s14  }
  0x27   : > { %212 = sbr.rel (%p792_p8) target bundleno = 335 (0x14f), region = 32 }
  0x2c   : > { %653 = dma.done.wait (%p773_p3), [#allocation3], 16  }
  0x2d   : > { %655 = vsyncadd (%p773_p3), [#allocation3], 4294967280  ;;  %s944_s0 = sadd.s32 4294967295, %s694_s22   ;;  %s221_s24 = sand.u32 1, %s670_s16  }
  0x2e   : > { %s219_s23 = sand.u32 1, %s944_s0   ;;  %s425_s8 = sshll.u32 %s221_s24, 4 }
  0x2f   : > { %s220_s9 = scalar_lea.sflag [#allocation5], %s219_s23  ;;  %s223_s10 = scalar_lea.vmem [#allocation4], %s425_s8 }
  0x30   : > { %657 = dma.done.wait (%p784_p6), %s220_s9, 256  }
  0x31   : > { %659 = vsyncadd (%p784_p6), %s220_s9, 4294967040 }
  0x32   : > { %661 = dma.done.wait (%p773_p3), [#allocation5], 256  }
  0x33   : > { %663 = vsyncadd (%p773_p3), [#allocation5], 4294967040  ;;  %p249_p2 = scmp.eq.s32.totalorder %s682_s19, 0  ;;  %p250_p4 = scmp.eq.s32.totalorder %s678_s18, 0 }
  0x35   : > { %p251_p5 = pnand %p250_p4, %p249_p2 }
  0x37   : > { %254 = sbr.rel (%p251_p5) target bundleno = 65 (0x41), region = 48 }
  0x3c   : > { %vm255_vm0 = vcmask 7168   ;;  %v701_v0 = vmov 0.0  }
  0x3d   : > { %256 = vst.msk [vmem:[%s923_s3] sm:$0xff] %vm255_vm0, %v701_v0 }
  0x3e   : > { %257 = vst.msk [vmem:[%s923_s3 + $0x8] sm:$0xff] %vm255_vm0, %v701_v0 }
  0x3f   : > { %258 = vst.msk [vmem:[%s924_s4] sm:$0xff] %vm255_vm0, %v701_v0 }
  0x40   : > { %259 = vst.msk [vmem:[%s924_s4 + $0x8] sm:$0xff] %vm255_vm0, %v701_v0 }
  0x41 PF: > { %v273_v1 = vld [vmem:[%s223_s10 + $0x8] sm:$0xff]  ;;  %v272_v2 = vld [vmem:[%s223_s10] sm:$0xff]  ;;  %vm274_vm1 = vcmask 130048   ;;  %v304_v13 = vlaneseq  ;;  %s429_s19 = sshll.u32 %s678_s18, 7  ;;  %vm320_vm3 = vcmask 7168  }
  0x42   : > { %v260_v3 = vld [vmem:[#allocation2] sm:$0x1]  ;;  %295 = vmatpush.msra.mxu0 %v273_v1  ;;  %432 = vmatpush.msra.mxu1 %v273_v1  ;;  %v265_v8 = vld [vmem:[#allocation6] sm:$0xff]  ;;  %v266_v9 = vld [vmem:[#allocation6 + $0x8] sm:$0xff]  ;;  %v307_v15 = vstv %s429_s19 }
  0x43   : > { %v261_v4 = vmul.f32 0.16666667, %v260_v3  ;;  %v305_v14 = vand.u32 127, %v304_v13 }
  0x44   : > { %296 = vmatpush.msra.mxu0 %v272_v2  ;;  %433 = vmatpush.msra.mxu1 %v272_v2  ;;  %v312_v23 = vld [vmem:[%s923_s3] sm:$0xff] }
  0x45   : > { %v262_v5 = vadd.f32 0.5, %v261_v4  ;;  %v308_v16 = vadd.s32 %v307_v15, %v305_v14  ;;  %v313_v29 = vld [vmem:[%s923_s3 + $0x8] sm:$0xff] }
  0x46   : > { %v323_v25 = vld [vmem:[%s924_s4] sm:$0xff] }
  0x47   : > { %v263_v6 = vmax.f32 %v262_v5, 0.0  ;;  %vm309_vm2 = vcmp.lt.s32.totalorder %v308_v16, 256  ;;  %v324_v31 = vld [vmem:[%s924_s4 + $0x8] sm:$0xff] }
  0x49   : > { %v264_v7 = vmin.f32 %v263_v6, 1.0 }
  0x4b   : > { %v268_v10 = vperm.slane %v264_v7, 0 }
  0x4d   : > { %v270_v11 = vmul.f32 %v268_v10, %v265_v8  ;;  %v271_v12 = vmul.f32 %v268_v10, %v266_v9 }
  0x4f   : > { %427 = vmatmul.msk.f32.vlgmr.msra.gmra.mxu0 %vm274_vm1, %v270_v11  ;;  %428 = vmatmul.msk.f32.vlgmr.msra.gmra.mxu1 %vm274_vm1, %v271_v12 }
  0xcc   : > { %v298_v17 = vpop.f32.mrf.mxu0  ;;  %v301_v20 = vpop.f32.mrf.mxu1 }
  0xcd   : > { %v310_v18 = vsel %vm309_vm2, %v298_v17, 0.0  ;;  %v311_v21 = vsel %vm309_vm2, %v301_v20, 0.0 }
  0xce   : > { %314 = vadd.xlane.f32.xlu0 %v310_v18  ;;  %v325_v19 = vmul.f32 %v310_v18, %v310_v18  ;;  %v326_v22 = vmul.f32 %v311_v21, %v311_v21 }
  0xd0   : > { %327 = vadd.xlane.f32.xlu1 %v325_v19 }
  0xd6   : > { %316 = vadd.xlane.f32.xlu0 %v311_v21 }
  0xd8   : > { %329 = vadd.xlane.f32.xlu1 %v326_v22 }
 0x141   : > { %v315_v24 = vpop.xlane.xlu0 %314 }
 0x142   : > { %v318_v26 = vadd.f32 %v315_v24, %v312_v23 }
 0x143   : > { %v328_v27 = vpop.xlane.xlu1 %327 }
 0x144   : > { %321 = vst.msk [vmem:[%s923_s3] sm:$0xff] %vm320_vm3, %v318_v26  ;;  %v331_v28 = vadd.f32 %v328_v27, %v323_v25 }
 0x146   : > { %333 = vst.msk [vmem:[%s924_s4] sm:$0xff] %vm320_vm3, %v331_v28 }
 0x149   : > { %v317_v30 = vpop.xlane.xlu0 %316 }
 0x14a   : > { %v319_v32 = vadd.f32 %v317_v30, %v313_v29 }
 0x14b   : > { %v330_v33 = vpop.xlane.xlu1 %329 }
 0x14c   : > { %322 = vst.msk [vmem:[%s923_s3 + $0x8] sm:$0xff] %vm320_vm3, %v319_v32  ;;  %v332_v34 = vadd.f32 %v330_v33, %v324_v31 }
 0x14e   : > { %334 = vst.msk [vmem:[%s924_s4 + $0x8] sm:$0xff] %vm320_vm3, %v332_v34 }
 0x14f PF: > { %s19_s22 = sadd.s32 1, %s694_s22   ;;  %s945_s18 = sld [smem:[#allocation10_spill]] }
 0x150   : > { %p16_p3 = scmp.ge.s32.totalorder %s19_s22, 6   ;;  %s946_s20 = sld [smem:[#allocation11_spill]] }
 0x151   : > { %s947_s15 = smov %s670_s16  ;;  %s948_s16 = smov %s674_s17 }
 0x152   : > { %s949_s17 = smov %s834_s29  ;;  %s950_s19 = smov %s690_s21 }
 0x153   : > { %s951_s21 = smov %s957_s28  ;;  %18 = sbr.rel (!%p16_p3) target bundleno = 9 (0x9), region = 89 }
 0x158   :  { %352 = vsyncpa [#allocation3], 1 }
 0x159   :  { %354 = vsyncpa [#allocation3 + $0x1], 1 }
 0x15a   :  { %355 = vsyncpa [#allocation5], 1 }
 0x15b   :  { %357 = vsyncpa [#allocation5 + $0x1], 1 }

</bundles_post_ra>
